<compile_context>
chip_gen: v5e
topology: v5e:2x2
jax: 0.10.0
libtpu: 0.0.40
codegen_flags: <defaults>
</compile_context>

<pallas_src>
import math

import jax
import jax.numpy as jnp
from jax import lax
from jax.experimental import pallas as pl
from jax.experimental.pallas import tpu as pltpu


_VMEM_LIMIT = 64 * 1024 * 1024  # raise v5e's 16 MiB scoped default; within v7x's 64 MiB.


def _const_spec(shape):
    """BlockSpec for a small replicated operand (same block for every grid step)."""
    zeros = (0,) * len(shape)
    # TODO(synk): for very large C on v5e/v7x, pipeline_mode=pl.Buffered(1) here
    # would single-buffer these constant blocks and halve their VMEM footprint.
    return pl.BlockSpec(shape, lambda *_: zeros)


def _kv_proj_kernel(hn_ref, wk_ref, bk_ref, wv_ref, bv_ref, k_ref, v_ref):
    """K/V projection, hoisted out of the attention q-loop (run once per batch).

    hn_ref:        (1, C, t) hard-negative tile (channel-major, lane-dense).
    k_ref, v_ref:  (1, C, t) projected tiles, stored in the MXU dtype.
    """
    hn = hn_ref[0].astype(wk_ref.dtype)                                   # (C, t)
    k = jnp.dot(wk_ref[...], hn, preferred_element_type=jnp.float32) + bk_ref[...]
    v = jnp.dot(wv_ref[...], hn, preferred_element_type=jnp.float32) + bv_ref[...]
    k_ref[0] = k.astype(k_ref.dtype)
    v_ref[0] = v.astype(v_ref.dtype)


def _hnca_kernel(x_ref, k_ref, v_ref,
                 wq_ref, bq_ref,        # scale-folded query proj: (C, C), (C, 1)
                 wo_ref, bo_ref,        # 1x1-conv output proj:    (C, C), (C, 1)
                 o_ref,
                 q_scr, m_scr, l_scr, acc_scr):
    """Flash cross-attention + residual + 1x1-conv epilogue, channel-major.

    Grid = (B, N//tq, N//tk); KV axis is last / "arbitrary".  Per-q-tile state:
      q_scr   (C, tq)  projected, scaled queries (MXU dtype)
      m_scr   (1, tq)  running max (f32, lane-dense)
      l_scr   (1, tq)  running sum (f32, lane-dense)
      acc_scr (C, tq)  output accumulator (f32)
    """
    ki = pl.program_id(2)
    nk = pl.num_programs(2)

    # ---- init (once per q-tile): query projection + flash statistics --------
    @pl.when(ki == 0)
    def _():
        x_cn = x_ref[0].astype(wq_ref.dtype)                  # (C, tq)
        # 1/sqrt(C) is folded into wq/bq on the host.
        q_cn = jnp.dot(wq_ref[...], x_cn,
                       preferred_element_type=jnp.float32) + bq_ref[...]
        q_scr[...] = q_cn.astype(q_scr.dtype)                 # stays channel-major
        m_scr[...] = jnp.full_like(m_scr, -jnp.inf)
        l_scr[...] = jnp.zeros_like(l_scr)
        acc_scr[...] = jnp.zeros_like(acc_scr)

    # ---- per kv-tile: online-softmax update (scores computed transposed) ----
    k_cn = k_ref[0]                                           # (C, tk), MXU dtype
    v_cn = v_ref[0]                                           # (C, tk), MXU dtype

    # s_t[k, q] = sum_c K[c, k] * Q[c, q]  ->  (tk, tq); the softmax reductions
    # run over the sublane axis so the statistics stay (1, tq) lane-dense.
    s_t = lax.dot_general(k_cn, q_scr[...], (((0,), (0,)), ((), ())),
                          preferred_element_type=jnp.float32)

    m_prev = m_scr[...]                                       # (1, tq)
    m_new = jnp.maximum(m_prev, jnp.max(s_t, axis=0, keepdims=True))
    alpha = jnp.exp(m_prev - m_new)                           # (1, tq)
    # TODO(synk): on v6e/v7x the exp could run in bf16 for ~2x EUP rate; kept f32.
    p_t = jnp.exp(s_t - m_new)                                # (tk, tq), f32
    l_scr[...] = alpha * l_scr[...] + jnp.sum(p_t, axis=0, keepdims=True)
    acc_scr[...] = alpha * acc_scr[...] + jnp.dot(
        v_cn, p_t.astype(v_cn.dtype),                         # (C, tk) @ (tk, tq)
        preferred_element_type=jnp.float32)
    m_scr[...] = m_new

    # ---- finalize: normalize, residual add, fused 1x1-conv projection -------
    @pl.when(ki == nk - 1)
    def _():
        inv_l = pl.reciprocal(l_scr[...], approx=False)       # (1, tq), epilogue only
        y_cn = acc_scr[...] * inv_l + x_ref[0]                # residual, (C, tq) f32
        out_cn = jnp.dot(wo_ref[...], y_cn.astype(wo_ref.dtype),
                         preferred_element_type=jnp.float32) + bo_ref[...]
        o_ref[0] = out_cn.astype(o_ref.dtype)                 # lane-dense store


def _pick_tile(n, requested, cap):
    """Largest multiple of 128 that divides n and is <= min(requested, cap)."""
    limit = min(requested, cap, n)
    if n % 128 == 0:
        t = max((limit // 128) * 128, 128)
        while t >= 128:
            if n % t == 0:
                return t
            t -= 128
        return 128
    # TODO(synk): pad N up to a multiple of 128 and mask instead of one big tile.
    return n


def hard_negative_cross_attention(x, hard_negatives, params, *,
                                  tq=512, tk=512, mxu_dtype=jnp.bfloat16):
    """Forward pass of HardNegativeCrossAttention.

    x, hard_negatives: (B, C, H, W) float32 (NCHW, as in the PyTorch module).
    mxu_dtype: dtype fed to the MXU (accumulation is always f32).  bf16 is the
               fast path on v5e/v6e/v7x; pass jnp.float32 for exact results.
    """
    B, C, H, W = x.shape
    N = H * W
    scale = 1.0 / math.sqrt(C)
    f32 = jnp.float32

    # NCHW -> (B, C, N): pure reshape, no HBM transpose; N stays on the lanes.
    x_cn = x.reshape(B, C, N)
    hn_cn = hard_negatives.reshape(B, C, N)

    # Tile selection: multiples of 128 dividing N; cap at 256 for very large C
    # so double-buffered tiles + (tk, tq) score temporaries fit v7x's 64 MiB VMEM.
    cap = 256 if C >= 1024 else 512
    tq = _pick_tile(N, tq, cap)
    tk = _pick_tile(N, tk, cap)
    # Guarantee >= 2 "parallel" grid slices so both v7x TensorCores get work.
    if B * (N // tq) < 2 and N % 256 == 0:
        tq = N // 2
    nq, nk = N // tq, N // tk

    # Host-side weight prep: fold the softmax scale into the query projection,
    # flatten the 1x1 Conv2d weight, use channel-major (column) biases.
    wq_s = (params["wq"] * scale).astype(mxu_dtype)
    bq_s = (params["bq"] * scale).reshape(C, 1).astype(f32)
    wk = params["wk"].astype(mxu_dtype)
    bk = params["bk"].reshape(C, 1).astype(f32)
    wv = params["wv"].astype(mxu_dtype)
    bv = params["bv"].reshape(C, 1).astype(f32)
    wo = params["wo"].reshape(C, C).astype(mxu_dtype)
    bo = params["bo"].reshape(C, 1).astype(f32)

    # ---- 1) K/V projection, once per batch (not once per q-tile) ------------
    kv_io_spec = pl.BlockSpec((1, C, tk), lambda b, i: (b, 0, i))
    k_proj, v_proj = pl.pallas_call(
        _kv_proj_kernel,
        out_shape=(jax.ShapeDtypeStruct((B, C, N), mxu_dtype),
                   jax.ShapeDtypeStruct((B, C, N), mxu_dtype)),
        grid_spec=pltpu.PrefetchScalarGridSpec(
            num_scalar_prefetch=0,
            grid=(B, nk),
            in_specs=[kv_io_spec,
                      _const_spec((C, C)), _const_spec((C, 1)),
                      _const_spec((C, C)), _const_spec((C, 1))],
            out_specs=(kv_io_spec, kv_io_spec)),
        compiler_params=pltpu.CompilerParams(
            dimension_semantics=("parallel", "parallel"),
            vmem_limit_bytes=_VMEM_LIMIT),
    )(hn_cn, wk, bk, wv, bv)

    # ---- 2) flash cross-attention + residual + 1x1-conv epilogue ------------
    q_tile_spec = pl.BlockSpec((1, C, tq), lambda b, qi, ki: (b, 0, qi))
    kv_tile_spec = pl.BlockSpec((1, C, tk), lambda b, qi, ki: (b, 0, ki))

    out = pl.pallas_call(
        _hnca_kernel,
        out_shape=jax.ShapeDtypeStruct((B, C, N), x.dtype),
        grid_spec=pltpu.PrefetchScalarGridSpec(
            num_scalar_prefetch=0,
            grid=(B, nq, nk),
            in_specs=[q_tile_spec, kv_tile_spec, kv_tile_spec,
                      _const_spec((C, C)), _const_spec((C, 1)),
                      _const_spec((C, C)), _const_spec((C, 1))],
            out_specs=q_tile_spec,
            scratch_shapes=[
                pltpu.VMEM((C, tq), mxu_dtype),     # projected, scaled queries
                pltpu.VMEM((1, tq), jnp.float32),   # running max (lane-dense)
                pltpu.VMEM((1, tq), jnp.float32),   # running sum (lane-dense)
                pltpu.VMEM((C, tq), jnp.float32),   # output accumulator
            ]),
        compiler_params=pltpu.CompilerParams(
            dimension_semantics=("parallel", "parallel", "arbitrary"),
            vmem_limit_bytes=_VMEM_LIMIT),
    )(x_cn, k_proj, v_proj, wq_s, bq_s, wo, bo)

    return out.reshape(B, C, H, W)


def _reference(x, hn, params):
    """Pure-JAX reference mirroring the PyTorch forward."""
    B, C, H, W = x.shape
    N = H * W
    xf = jnp.transpose(x.reshape(B, C, N), (0, 2, 1))
    hf = jnp.transpose(hn.reshape(B, C, N), (0, 2, 1))
    Q = xf @ params["wq"].T + params["bq"]
    K = hf @ params["wk"].T + params["bk"]
    V = hf @ params["wv"].T + params["bv"]
    s = jax.nn.softmax(jnp.einsum("bnc,bmc->bnm", Q, K) / math.sqrt(C), axis=-1)
    ao = jnp.einsum("bnm,bmc->bnc", s, V)
    y = ao + xf
    out = y @ params["wo"].reshape(C, C).T + params["bo"]
    return jnp.transpose(out, (0, 2, 1)).reshape(B, C, H, W)


def make_params(key, in_dim):
    ks = jax.random.split(key, 8)

    def lin(kw, kb, wshape):
        w = jax.random.normal(kw, wshape, jnp.float32) * 0.1
        b = jax.random.normal(kb, (in_dim,), jnp.float32) * 0.1
        return w, b

    wq, bq = lin(ks[0], ks[1], (in_dim, in_dim))
    wk, bk = lin(ks[2], ks[3], (in_dim, in_dim))
    wv, bv = lin(ks[4], ks[5], (in_dim, in_dim))
    # Conv2d(in_dim, in_dim, 1) weight has shape (out, in, 1, 1).
    wo, bo = lin(ks[6], ks[7], (in_dim, in_dim, 1, 1))
    return dict(wq=wq, bq=bq, wk=wk, bk=bk, wv=wv, bv=bv, wo=wo, bo=bo)


if __name__ == "__main__":
    B, C, H, W = 2, 4, 16, 16   # in_dim = C = 4, N = 256
    key = jax.random.PRNGKey(0)
    kx, kh, kp = jax.random.split(key, 3)
    x = jax.random.normal(kx, (B, C, H, W), jnp.float32)
    hard_negatives = jax.random.normal(kh, (B, C, H, W), jnp.float32)
    params = make_params(kp, C)

    ref = _reference(x, hard_negatives, params)

    # tq=tk=128 so the multi-tile flash path (grid 2x2x2) is exercised.
    # 1) exact-precision path (f32 MXU inputs): verifies semantics to 1e-4.
    out_f32 = hard_negative_cross_attention(x, hard_negatives, params,
                                            tq=128, tk=128, mxu_dtype=jnp.float32)
    out_f32 = jax.block_until_ready(out_f32)
    assert out_f32.shape == (B, C, H, W)
    err_f32 = float(jnp.max(jnp.abs(out_f32 - ref)))
    assert jnp.allclose(out_f32, ref, atol=1e-4, rtol=1e-4), err_f32

    # 2) fast path (bf16 MXU inputs, f32 accumulation): bf16-level tolerance.
    out_bf16 = hard_negative_cross_attention(x, hard_negatives, params,
                                             tq=128, tk=128, mxu_dtype=jnp.bfloat16)
    out_bf16 = jax.block_until_ready(out_bf16)
    err_bf16 = float(jnp.max(jnp.abs(out_bf16 - ref)))
    assert jnp.allclose(out_bf16, ref, atol=3e-2, rtol=3e-2), err_bf16

    print("KERNEL_OK")
</pallas_src>

<mosaic_0001>
module attributes {stable_mosaic.version = 11 : i64} {
  func.func @_kv_proj_kernel(%arg0: i32, %arg1: i32, %arg2: memref<1x4x128xf32, #tpu.memory_space<vmem>>, %arg3: memref<4x4xf32, #tpu.memory_space<vmem>>, %arg4: memref<4x1xf32, #tpu.memory_space<vmem>>, %arg5: memref<4x4xf32, #tpu.memory_space<vmem>>, %arg6: memref<4x1xf32, #tpu.memory_space<vmem>>, %arg7: memref<1x4x128xf32, #tpu.memory_space<vmem>>, %arg8: memref<1x4x128xf32, #tpu.memory_space<vmem>>) attributes {dimension_semantics = [#tpu.dimension_semantics<parallel>, #tpu.dimension_semantics<parallel>], iteration_bounds = array<i64: 2, 2>, scalar_prefetch = 0 : i64, scratch_operands = 0 : i64, tpu.core_type = #tpu.core_type<tc>, window_params = [{transform_indices = @transform_0, window_bounds = array<i64: 1, 4, 128>}, {pipeline_mode = #tpu.pipeline_mode<synchronous>, transform_indices = @transform_1, window_bounds = array<i64: 4, 4>}, {pipeline_mode = #tpu.pipeline_mode<synchronous>, transform_indices = @transform_2, window_bounds = array<i64: 4, 1>}, {pipeline_mode = #tpu.pipeline_mode<synchronous>, transform_indices = @transform_3, window_bounds = array<i64: 4, 4>}, {pipeline_mode = #tpu.pipeline_mode<synchronous>, transform_indices = @transform_4, window_bounds = array<i64: 4, 1>}, {transform_indices = @transform_5, window_bounds = array<i64: 1, 4, 128>}, {transform_indices = @transform_6, window_bounds = array<i64: 1, 4, 128>}]} {
    %c0 = arith.constant 0 : index
    %c0_0 = arith.constant 0 : index
    %c0_1 = arith.constant 0 : index
    %0 = vector.load %arg2[%c0, %c0_0, %c0_1] : memref<1x4x128xf32, #tpu.memory_space<vmem>>, vector<1x4x128xf32>
    %1 = vector.shape_cast %0 : vector<1x4x128xf32> to vector<4x128xf32>
    %c0_2 = arith.constant 0 : index
    %c0_3 = arith.constant 0 : index
    %2 = vector.load %arg3[%c0_2, %c0_3] : memref<4x4xf32, #tpu.memory_space<vmem>>, vector<4x4xf32>
    %cst = arith.constant dense<0.000000e+00> : vector<4x128xf32>
    %3 = tpu.matmul %2, %1, %cst {dimension_numbers = #tpu.dot_dimension_numbers<[1], [0], [0], [1], [0, 0, 1, 1], [], []>} : vector<4x4xf32>, vector<4x128xf32>, vector<4x128xf32> -> vector<4x128xf32>
    %c0_4 = arith.constant 0 : index
    %c0_5 = arith.constant 0 : index
    %4 = vector.load %arg4[%c0_4, %c0_5] : memref<4x1xf32, #tpu.memory_space<vmem>>, vector<4x1xf32>
    %5 = vector.broadcast %4 : vector<4x1xf32> to vector<4x128xf32>
    %6 = arith.addf %3, %5 : vector<4x128xf32>
    %c0_6 = arith.constant 0 : index
    %c0_7 = arith.constant 0 : index
    %7 = vector.load %arg5[%c0_6, %c0_7] : memref<4x4xf32, #tpu.memory_space<vmem>>, vector<4x4xf32>
    %cst_8 = arith.constant dense<0.000000e+00> : vector<4x128xf32>
    %8 = tpu.matmul %7, %1, %cst_8 {dimension_numbers = #tpu.dot_dimension_numbers<[1], [0], [0], [1], [0, 0, 1, 1], [], []>} : vector<4x4xf32>, vector<4x128xf32>, vector<4x128xf32> -> vector<4x128xf32>
    %c0_9 = arith.constant 0 : index
    %c0_10 = arith.constant 0 : index
    %9 = vector.load %arg6[%c0_9, %c0_10] : memref<4x1xf32, #tpu.memory_space<vmem>>, vector<4x1xf32>
    %10 = vector.broadcast %9 : vector<4x1xf32> to vector<4x128xf32>
    %11 = arith.addf %8, %10 : vector<4x128xf32>
    %c0_11 = arith.constant 0 : index
    %c0_12 = arith.constant 0 : index
    %c0_13 = arith.constant 0 : index
    %12 = vector.load %arg7[%c0_11, %c0_12, %c0_13] : memref<1x4x128xf32, #tpu.memory_space<vmem>>, vector<1x4x128xf32>
    %13 = vector.shape_cast %12 : vector<1x4x128xf32> to vector<4x128xf32>
    %14 = vector.shape_cast %6 : vector<4x128xf32> to vector<1x4x128xf32>
    tpu.vector_store %arg7[%c0_11, %c0_12, %c0_13], %14 {strides = array<i32>} : memref<1x4x128xf32, #tpu.memory_space<vmem>>, vector<1x4x128xf32>,
    %c0_14 = arith.constant 0 : index
    %c0_15 = arith.constant 0 : index
    %c0_16 = arith.constant 0 : index
    %15 = vector.load %arg8[%c0_14, %c0_15, %c0_16] : memref<1x4x128xf32, #tpu.memory_space<vmem>>, vector<1x4x128xf32>
    %16 = vector.shape_cast %15 : vector<1x4x128xf32> to vector<4x128xf32>
    %17 = vector.shape_cast %11 : vector<4x128xf32> to vector<1x4x128xf32>
    tpu.vector_store %arg8[%c0_14, %c0_15, %c0_16], %17 {strides = array<i32>} : memref<1x4x128xf32, #tpu.memory_space<vmem>>, vector<1x4x128xf32>,
    return
  }
  func.func @transform_0(%arg0: i32, %arg1: i32) -> (i32, i32, i32) {
    %c0_i32 = arith.constant 0 : i32
    %c0_i32_0 = arith.constant 0 : i32
    return %arg0, %c0_i32, %arg1 : i32, i32, i32
  }
  func.func @transform_1(%arg0: i32, %arg1: i32) -> (i32, i32) {
    %c0_i32 = arith.constant 0 : i32
    %c0_i32_0 = arith.constant 0 : i32
    %c0_i32_1 = arith.constant 0 : i32
    return %c0_i32, %c0_i32_0 : i32, i32
  }
  func.func @transform_2(%arg0: i32, %arg1: i32) -> (i32, i32) {
    %c0_i32 = arith.constant 0 : i32
    %c0_i32_0 = arith.constant 0 : i32
    %c0_i32_1 = arith.constant 0 : i32
    return %c0_i32, %c0_i32_0 : i32, i32
  }
  func.func @transform_3(%arg0: i32, %arg1: i32) -> (i32, i32) {
    %c0_i32 = arith.constant 0 : i32
    %c0_i32_0 = arith.constant 0 : i32
    %c0_i32_1 = arith.constant 0 : i32
    return %c0_i32, %c0_i32_0 : i32, i32
  }
  func.func @transform_4(%arg0: i32, %arg1: i32) -> (i32, i32) {
    %c0_i32 = arith.constant 0 : i32
    %c0_i32_0 = arith.constant 0 : i32
    %c0_i32_1 = arith.constant 0 : i32
    return %c0_i32, %c0_i32_0 : i32, i32
  }
  func.func @transform_5(%arg0: i32, %arg1: i32) -> (i32, i32, i32) {
    %c0_i32 = arith.constant 0 : i32
    %c0_i32_0 = arith.constant 0 : i32
    return %arg0, %c0_i32, %arg1 : i32, i32, i32
  }
  func.func @transform_6(%arg0: i32, %arg1: i32) -> (i32, i32, i32) {
    %c0_i32 = arith.constant 0 : i32
    %c0_i32_0 = arith.constant 0 : i32
    return %arg0, %c0_i32, %arg1 : i32, i32, i32
  }
}

</mosaic_0001>

<bundles_post_ra>
// kernel: tpu_custom_call.1
= control target key start
LH: loop header
LB: loop body
LE: loop exit
PB: predicated region body
PF: predicated region fallthrough
CT: control target
= control target key end

     0   :  { %s1018_s0 = inlined_call_operand.hbm [shape: f32[2,4,256], index: 0, kind: input, shape index: {}]   ;;  %s1019_s1 = inlined_call_operand.vmem [shape: f32[4,4], index: 1, kind: input, shape index: {}]   ;;  %s1020_s2 = inlined_call_operand.vmem [shape: f32[4,1], index: 2, kind: input, shape index: {}]   ;;  %s1021_s3 = inlined_call_operand.vmem [shape: f32[4,4], index: 3, kind: input, shape index: {}]   ;;  %s1022_s4 = inlined_call_operand.vmem [shape: f32[4,1], index: 4, kind: input, shape index: {}]   ;;  %s1023_s5 = inlined_call_operand.hbm [shape: f32[2,4,256], index: 5, kind: output, shape index: {0}]   ;;  %s1024_s6 = inlined_call_operand.hbm [shape: f32[2,4,256], index: 6, kind: output, shape index: {1}]  }
   0x1   :  { %1029 = sst [smem:[#allocation15_spill]] %s1018_s0 }
   0x2   :  { %12 = vsyncpa [#allocation3], 0 }
   0x3   :  { %14 = vsyncpa [#allocation3 + $0x1], 0 }
   0x4   :  { %15 = vsyncpa [#allocation4], 0 }
   0x5   :  { %17 = vsyncpa [#allocation4 + $0x1], 0 }
   0x6   :  { %18 = vsyncpa [#allocation7], 0 }
   0x7   :  { %20 = vsyncpa [#allocation7 + $0x1], 0  ;;  %s833_s21 = smov 0   ;;  %s835_s22 = smov 0  }
   0x8   :  { %s837_s23 = smov 0   ;;  %s839_s24 = smov 0  }
   0x9   :  { %s841_s25 = smov 0   ;;  %s843_s26 = smov 0  }
   0xa   :  { %s845_s27 = smov 0   ;;  %s847_s28 = smov 0  }
   0xb LB: > { %1030 = sst [smem:[#allocation11_spill]] %s767_s21  ;;  %s527_s29 = sadd.s32 4294967295, %s795_s28   ;;  %s795_s28 = sphi %s847_s28, %s26_s28   ;;  %s791_s27 = sphi %s845_s27, %s1049_s27   ;;  %s787_s26 = sphi %s843_s26, %s1048_s26   ;;  %s783_s25 = sphi %s841_s25, %s1047_s25   ;;  %s779_s24 = sphi %s839_s24, %s1046_s24   ;;  %s775_s23 = sphi %s837_s23, %s1045_s23   ;;  %s771_s22 = sphi %s835_s22, %s1044_s22   ;;  %s767_s21 = sphi %s833_s21, %s1043_s21  }
   0xc   : > { %s528_s30 = sadd.s32 4294967294, %s795_s28   ;;  %s35_s7 = sadd.s32 1, %s787_s26 }
   0xd   : > { %s38_s8 = sadd.s32 1, %s791_s27  ;;  %p36_p0 = scmp.ge.s32.totalorder %s35_s7, 2 }
   0xe   : > { %s47_s9 = sadd.s32 1, %s775_s23  ;;  %p54_p1 = scmp.ne.s32.totalorder %s775_s23, %s771_s22 }
   0xf   : > { %p55_p2 = scmp.eq.s32.totalorder %s795_s28, 0  ;;  %s1051_s7 = smov (%p36_p0, %s35_s7), 0 }
  0x10   : > { %1031 = sst [smem:[#allocation12_spill]] %s1051_s7  ;;  %s1053_s8 = smov (!%p36_p0, %s38_s8), %s791_s27 }
  0x11   : > { %s43_s10 = ssub.s32 %s787_s26, %s1051_s7  ;;  %p886_p3 = por %p55_p2, %p54_p1 }
  0x12   : > { %p40_p4 = scmp.ge.s32.totalorder %s1053_s8, 2  ;;  %p60_p5 = scmp.ne.s32.totalorder %s771_s22, %s767_s21 }
  0x13   : > { %p61_p6 = scmp.eq.s32.totalorder %s527_s29, 0  ;;  %p170_p7 = scmp.eq.s32.totalorder %s527_s29, 3 }
  0x14   : > { %s1055_s8 = smov (%p40_p4, %s1053_s8), 0  ;;  %p176_p10 = scmp.eq.s32.totalorder %s528_s30, 3 }
  0x15   : > { %1033 = sst [smem:[#allocation13_spill]] %s1055_s8  ;;  %p894_p8 = por %p61_p6, %p60_p5 }
  0x16   : > { %p898_p9 = por %p170_p7, %p54_p1  ;;  %s42_s14 = ssub.s32 %s791_s27, %s1055_s8 }
  0x17   : > { %s44_s15 = sor.u32 %s43_s10, %s42_s14  ;;  %p904_p12 = por %p176_p10, %p60_p5 }
  0x18   : > { %p45_p11 = scmp.eq.s32.totalorder %s44_s15, 0  ;;  %p567_p13 = scmp.lt.s32.totalorder %s795_s28, 4 }
  0x19   : > { %s1036_s16 = scalar_select %p904_p12, 1, 0 }
  0x1a   : > { %s236_s17 = sand.u32 1, %s775_s23   ;;  %s532_s20 = sshll.u32 %s791_s27, 1 }
  0x1b   : > { %1037 = sst [smem:[#allocation14_spill]] %s1036_s16  ;;  %s531_s19 = sshll.u32 %s236_s17, 2 }
  0x1c   : > { %s911_s18 = scalar_select %p45_p11, %s775_s23, %s47_s9  }
  0x1d   : > { %s244_s29 = sadd.s32 %s787_s26, %s532_s20  ;;  %s240_s7 = scalar_lea.vmem [#allocation2], %s531_s19 }
  0x1e   : > { %s250_s21 = sshll.u32 %s240_s7, 4  ;;  %s533_s8 = sshll.u32 %s244_s29, 2  ;;  %s251_s21 = int_to_ptr.vmem [resolvable:$true] %s250_s21 }
  0x1f   : > { %s1038_s0 = sld [smem:[#allocation15_spill]]  ;;  %p557_p0 = pnand %p567_p13, %p886_p3 }
  0x20   : > { %p534_p1 = scmp.ge.s32.totalorder %s795_s28, 1  ;;  %s237_s16 = scalar_lea.sflag [#allocation3], %s236_s17 }
  0x21   : > { %p255_p2 = scmp.lt.s32.totalorder %s795_s28, 5 }
  0x23   : > { %p256_p4 = pnand %p534_p1, %p255_p2 }
  0x24   : > { %s923_s9 = sand.u32 (!%p256_p4), 1, %s771_s22  }
  0x25   : > { %s246_s14 = scalar_lea.hbm %s1038_s0, %s533_s8  ;;  %259 = sbr.rel (%p256_p4) target bundleno = 190 (0xbe), region = 40 }
  0x26   : > { %s248_s15 = sshll.u32 %s246_s14, 4  ;;  %s926_s7 = sshll.u32 (!%p256_p4), %s923_s9, 2  ;;  %s249_s15 = int_to_ptr.hbm [resolvable:$true] %s248_s15 }
  0x27   : > { %559 = dma.hbm_to_vmem [thread:$0]  (!%p557_p0), %s249_s15, 64, %s251_s21, %s237_s16  }
  0x28   : > { %s262_s8 = scalar_lea.sflag (!%p256_p4), [#allocation3], %s923_s9  ;;  %s265_s11 = scalar_lea.vmem (!%p256_p4), [#allocation2], %s926_s7 }
  0x2a   : > { %754 = dma.done.wait (%p894_p8), %s262_s8, 64  }
  0x2b   : > { %756 = vsyncadd (%p894_p8), %s262_s8, 4294967232  ;;  %v797_v0 = vmov 0   ;;  %vm312_vm0 = vcmask 1043456   ;;  %vm308_vm1 = vcmask 31744   ;;  %v302_v1 = vld [vmem:[%s1020_s2] sm:$0xf] }
  0x2c   : > { %634 = vset.pattern.permute.xlu0 %v797_v0  ;;  %v300_v2 = vld [vmem:[%s265_s11] sm:$0xf]  ;;  %s544_s10 = sshll.u32 %s783_s25, 1  ;;  %s292_s12 = scalar_lea.vmem [#allocation5], %s926_s7 }
  0x2d   : > { %v301_v3 = vld [vmem:[%s1019_s1] sm:$0xf]  ;;  %305 = vperm.xlu0 %634, %v302_v1   ;;  %538 = vmatpush.msk.msra.mxu0 %vm312_vm0, %v300_v2  ;;  %s384_s14 = sadd.s32 %s779_s24, %s544_s10  ;;  %s955_s20 = sshll.u32 %s292_s12, 4  ;;  %s389_s20 = int_to_ptr.vmem [resolvable:$true] %s955_s20 }
  0x2e   : > { %v336_v4 = vld [vmem:[%s1021_s3] sm:$0xf]  ;;  %540 = vmatpush.msk.msra.mxu1 %vm312_vm0, %v300_v2  ;;  %539 = vmatmul.msk.f32.vlgmr.msra.gmra.mxu0 %vm308_vm1, %v301_v3  ;;  %s545_s15 = sshll.u32 %s384_s14, 2  ;;  %s299_s30 = scalar_lea.vmem [#allocation6], %s926_s7 }
  0x2f   : > { %541 = vmatmul.msk.f32.vlgmr.msra.gmra.mxu1 %vm308_vm1, %v336_v4  ;;  %v337_v5 = vld [vmem:[%s1022_s4] sm:$0xf]  ;;  %s386_s21 = scalar_lea.hbm %s1023_s5, %s545_s15  ;;  %s402_s19 = scalar_lea.hbm %s1024_s6, %s545_s15 }
  0x30   : > { %s390_s29 = sshll.u32 %s386_s21, 4  ;;  %s958_s0 = sshll.u32 %s299_s30, 4  ;;  %s391_s29 = int_to_ptr.hbm [resolvable:$true] %s390_s29  ;;  %s405_s0 = int_to_ptr.vmem [resolvable:$true] %s958_s0 }
  0x31   : > { %s406_s24 = sshll.u32 %s402_s19, 4  ;;  %s369_s25 = scalar_lea.sflag [#allocation4], %s923_s9  ;;  %s962_s24 = int_to_ptr.hbm [resolvable:$true] %s406_s24 }
  0x32   : > { %s679_s10 = sshra.s32 %s391_s29, 4  ;;  %s685_s8 = scalar_lea.hbm %s1023_s5, 16  ;;  %s680_s10 = int_to_ptr.hbm [resolvable:$true] %s679_s10 }
  0x33   : > { %s681_s7 = scalar_lea.hbm %s680_s10, 4  ;;  %p686_p7 = scmp.lt.s32.totalorder %s680_s10, %s1023_s5 }
  0x34   : > { %p682_p3 = scmp.ne.s32.totalorder %s680_s10, %s681_s7  ;;  %p687_p8 = scmp.lt.s32.totalorder %s685_s8, %s681_s7 }
  0x35   : > { %340 = vperm.xlu0 %634, %v337_v5  }
  0x36   : > { %p683_p5 = pnand %p682_p3, %p898_p9  ;;  %p688_p10 = por %p687_p8, %p686_p7 }
  0x38   : > { %p684_p6 = pneg %p683_p5 }
  0x3a   : > { %p689_p11 = pnand %p688_p10, %p684_p6 }
  0x9f   : > { %v306_v6 = vpop.permute.xlu0 %305 }
  0xa7   : > { %v341_v8 = vpop.permute.xlu0 %340 }
  0xab   : > { %v333_v7 = vpop.f32.mrf.mxu0 }
  0xac   : > { %v334_v9 = vadd.f32 %v333_v7, %v306_v6  ;;  %v363_v10 = vpop.f32.mrf.mxu1 }
  0xad   : > { %v364_v11 = vadd.f32 %v363_v10, %v341_v8 }
  0xae   : > { %366 = vst [vmem:[%s292_s12] sm:$0xf] %v334_v9 }
  0xaf   : > { %367 = vst [vmem:[%s299_s30] sm:$0xf] %v364_v11 }
  0xb0   : > { %692 = shalt.err (!%p689_p11)
}
  0xb1   : > { %552 = dma.vmem_to_hbm [thread:$0]  (%p898_p9), %s389_s20, 64, %s391_s29, %s369_s25  }
  0xb2   : > { %s374_s16 = scalar_lea.sflag [#allocation7], %s923_s9  ;;  %s707_s17 = sshra.s32 %s962_s24, 4  ;;  %s708_s17 = int_to_ptr.hbm [resolvable:$true] %s707_s17 }
  0xb3   : > { %s709_s19 = scalar_lea.hbm %s708_s17, 4  ;;  %s713_s10 = scalar_lea.hbm %s1024_s6, 16 }
  0xb4   : > { %p710_p13 = scmp.ne.s32.totalorder %s708_s17, %s709_s19  ;;  %p714_p2 = scmp.lt.s32.totalorder %s708_s17, %s1024_s6 }
  0xb5   : > { %p715_p4 = scmp.lt.s32.totalorder %s713_s10, %s709_s19 }
  0xb6   : > { %p711_p0 = pnand %p710_p13, %p898_p9 }
  0xb7   : > { %p716_p3 = por %p715_p4, %p714_p2 }
  0xb8   : > { %p712_p1 = pneg %p711_p0 }
  0xba   : > { %p717_p5 = pnand %p716_p3, %p712_p1 }
  0xbc   : > { %720 = shalt.err (!%p717_p5)
}
  0xbd   : > { %553 = dma.vmem_to_hbm [thread:$0]  (%p898_p9), %s405_s0, 64, %s962_s24, %s374_s16  }
  0xbe PF: > { %s1039_s9 = sld [smem:[#allocation11_spill]]  ;;  %p568_p6 = scmp.ge.s32.totalorder %s795_s28, 2 }
  0xc0   : > { %p561_p7 = pnand %p568_p6, %p904_p12 }
  0xc2   : > { %p562_p8 = pneg %p561_p7 }
  0xc4   : > { %s418_s29 = sand.u32 1, %s1039_s9  }
  0xc5   : > { %s419_s25 = scalar_lea.sflag [#allocation4], %s418_s29 }
  0xc6   : > { %758 = dma.done.wait (%p562_p8), %s419_s25, 64  }
  0xc7   : > { %760 = vsyncadd (%p562_p8), %s419_s25, 4294967232  ;;  %s429_s15 = scalar_lea.sflag [#allocation7], %s418_s29 }
  0xc8   : > { %762 = dma.done.wait (%p562_p8), %s429_s15, 64  }
  0xc9   : > { %764 = vsyncadd (%p562_p8), %s429_s15, 4294967232  ;;  %s26_s28 = sadd.s32 1, %s795_s28   ;;  %s1041_s0 = sld [smem:[#allocation12_spill]] }
  0xca   : > { %p23_p10 = scmp.ge.s32.totalorder %s26_s28, 6   ;;  %s1042_s13 = sld [smem:[#allocation13_spill]] }
  0xcb   : > { %s1043_s21 = smov %s771_s22  ;;  %s1044_s22 = smov %s775_s23 }
  0xcc   : > { %s1045_s23 = smov %s911_s18  ;;  %s1046_s24 = smov %s787_s26 }
  0xcd   : > { %s1047_s25 = smov %s791_s27  ;;  %25 = sbr.rel (!%p23_p10) target bundleno = 11 (0xb), region = 102 }
  0xcf   : > { %s1048_s26 = smov %s1041_s0 }
  0xd0   : > { %s1049_s27 = smov %s1042_s13 }
  0xd2   :  { %435 = vsyncpa [#allocation3], 1 }
  0xd3   :  { %437 = vsyncpa [#allocation3 + $0x1], 1 }
  0xd4   :  { %438 = vsyncpa [#allocation4], 1 }
  0xd5   :  { %440 = vsyncpa [#allocation4 + $0x1], 1 }
  0xd6   :  { %441 = vsyncpa [#allocation7], 1 }
  0xd7   :  { %443 = vsyncpa [#allocation7 + $0x1], 1 }

</bundles_post_ra>
